<compile_context>
chip_gen: v7x
topology: tpu7x:2x2x1
jax: 0.10.0
libtpu: 0.0.40
codegen_flags: <defaults>
</compile_context>

<pallas_src>
import functools

import jax
import jax.numpy as jnp
from jax import lax
from jax.experimental import pallas as pl
from jax.experimental.pallas import tpu as pltpu


def _disc_kernel(z_ref, w1_ref, b1_ref, w2_ref, b2_ref, w3_ref, b3_ref, o_ref):
    """Whole MLP forward for one batch tile (all weights resident in VMEM).

    Feature-major layout: batch lives on the lane axis of every intermediate.

    z_ref : (batch_tile, z_dim)          -- as delivered from HBM
    w1    : (hid, z_dim)  b1 : (hid, 1)  -- PyTorch (out, in) layouts
    w2    : (hid, hid)    b2 : (hid, 1)
    w3    : (1, hid)      b3 : (1, 1)
    o_ref : (1, batch_tile)              -- lane-dense row of probabilities
    """
    z = z_ref[...]                                                # (bt, z_dim)

    # h1 = W1 @ z^T  -> (hid, bt); the dot absorbs the transpose (A @ B^T).
    h1 = lax.dot_general(
        w1_ref[...], z,
        dimension_numbers=(((1,), (1,)), ((), ())),
        preferred_element_type=jnp.float32,
    ) + b1_ref[...]
    h1 = jnp.maximum(h1, 0.0)                                     # ReLU

    # h2 = W2 @ h1 -> (hid, bt)
    h2 = lax.dot_general(
        w2_ref[...], h1,
        dimension_numbers=(((1,), (0,)), ((), ())),
        preferred_element_type=jnp.float32,
    ) + b2_ref[...]
    h2 = jnp.maximum(h2, 0.0)                                     # ReLU

    # logits = W3 @ h2 -> (1, bt): lane-dense output row, full-lane store.
    logits = lax.dot_general(
        w3_ref[...], h2,
        dimension_numbers=(((1,), (0,)), ((), ())),
        preferred_element_type=jnp.float32,
    ) + b3_ref[...]

    o_ref[...] = jax.nn.sigmoid(logits).astype(o_ref.dtype)       # Sigmoid


def _pick_batch_tile(B, *, max_tile=8192, min_tiles=2):
    """Batch tile: multiple of 128, <= max_tile, and (when B allows it) at
    least `min_tiles` grid steps so the 'parallel' axis splits across both
    v7x TensorCores."""
    lane_chunks = (B + 127) // 128                  # 128-row groups needed
    chunks_per_tile = max(1, (lane_chunks + min_tiles - 1) // min_tiles)
    return int(min(max_tile, chunks_per_tile * 128))


@functools.partial(jax.jit, static_argnames=("batch_tile",))
def discriminator_forward(z, params, *, batch_tile=None):
    """z: (B, z_dim) float32. Returns (B,) float32 probabilities (nn.Sigmoid)."""
    w1, b1, w2, b2, w3, b3 = params
    B, z_dim = z.shape
    hid = w1.shape[0]

    if batch_tile is None:
        batch_tile = _pick_batch_tile(B)
    assert batch_tile % 128 == 0, "batch_tile must be a multiple of 128"

    num_tiles = pl.cdiv(B, batch_tile)
    b_pad = num_tiles * batch_tile
    # NOTE: z is NOT padded. The ragged last tile is handled by Pallas'
    # partial-block edge DMA; garbage batch columns stay independent (all ops
    # are batch-wise independent) and are trimmed by the final slice.

    out = pl.pallas_call(
        _disc_kernel,
        out_shape=jax.ShapeDtypeStruct((1, b_pad), jnp.float32),
        grid_spec=pltpu.PrefetchScalarGridSpec(
            num_scalar_prefetch=0,
            grid=(num_tiles,),
            in_specs=[
                # batch-tiled activations (dominant HBM traffic)
                pl.BlockSpec((batch_tile, z_dim), lambda i: (i, 0)),
                # full (tiny) weights / biases: constant block index, so the
                # pipeline fetches them once and keeps them resident in VMEM.
                pl.BlockSpec((hid, z_dim), lambda i: (0, 0)),
                pl.BlockSpec((hid, 1), lambda i: (0, 0)),
                pl.BlockSpec((hid, hid), lambda i: (0, 0)),
                pl.BlockSpec((hid, 1), lambda i: (0, 0)),
                pl.BlockSpec((1, hid), lambda i: (0, 0)),
                pl.BlockSpec((1, 1), lambda i: (0, 0)),
            ],
            # Lane-dense output: one (1, batch_tile) row per grid step.
            out_specs=pl.BlockSpec((1, batch_tile), lambda i: (0, i)),
        ),
        compiler_params=pltpu.CompilerParams(
            dimension_semantics=("parallel",),
            vmem_limit_bytes=32 * 1024 * 1024,   # raises v5e's 16 MiB default
        ),
    )(z, w1, b1, w2, b2, w3, b3)

    return out[0, :B]  # drop padding; matches logits.squeeze(-1)


def init_discriminator_params(key, z_dim):
    """Kaiming-normal (fan_in, gain=sqrt(2)) weights, zero biases — matches
    kaiming_init() in the reference module.

    All weights kept in PyTorch (out_features, in_features) layout; biases are
    stored as (out_features, 1) columns so they broadcast over the lane (batch)
    axis inside the kernel.
    """
    hid = z_dim // 2
    k1, k2, k3 = jax.random.split(key, 3)

    def kaiming(k, shape, fan_in):
        std = (2.0 / fan_in) ** 0.5
        return jax.random.normal(k, shape, jnp.float32) * std

    w1 = kaiming(k1, (hid, z_dim), z_dim)   # torch layout (out, in)
    b1 = jnp.zeros((hid, 1), jnp.float32)
    w2 = kaiming(k2, (hid, hid), hid)
    b2 = jnp.zeros((hid, 1), jnp.float32)
    w3 = kaiming(k3, (1, hid), hid)
    b3 = jnp.zeros((1, 1), jnp.float32)
    return (w1, b1, w2, b2, w3, b3)


def _reference_forward(z, params):
    """Plain-JAX reference for correctness check."""
    w1, b1, w2, b2, w3, b3 = params
    h1 = jnp.maximum(z @ w1.T + b1.T, 0.0)
    h2 = jnp.maximum(h1 @ w2.T + b2.T, 0.0)
    return jax.nn.sigmoid(h2 @ w3.T + b3.T)[:, 0]


if __name__ == "__main__":
    key = jax.random.PRNGKey(0)
    k_z, k_p = jax.random.split(key)

    B, Z_DIM = 1000, 32                       # B not a multiple of 128 or tile
    z = jax.random.normal(k_z, (B, Z_DIM), jnp.float32)
    params = init_discriminator_params(k_p, Z_DIM)
    ref = _reference_forward(z, params)

    # Adaptive tile (512 here -> 2 grid steps, ragged last tile, no padding).
    out_a = jax.block_until_ready(discriminator_forward(z, params))
    # Small tile: multi-step grid + ragged tail.
    out_b = jax.block_until_ready(discriminator_forward(z, params, batch_tile=128))
    # Single large tile covering the ragged batch.
    out_c = jax.block_until_ready(discriminator_forward(z, params, batch_tile=1024))

    for out in (out_a, out_b, out_c):
        assert out.shape == (B,)
        assert jnp.allclose(out, ref, atol=1e-5, rtol=1e-5)

    print("KERNEL_OK")
</pallas_src>

<mosaic_0001>
module attributes {stable_mosaic.version = 11 : i64} {
  func.func @_disc_kernel(%arg0: i32, %arg1: memref<512x32xf32, #tpu.memory_space<vmem>>, %arg2: memref<16x32xf32, #tpu.memory_space<vmem>>, %arg3: memref<16x1xf32, #tpu.memory_space<vmem>>, %arg4: memref<16x16xf32, #tpu.memory_space<vmem>>, %arg5: memref<16x1xf32, #tpu.memory_space<vmem>>, %arg6: memref<1x16xf32, #tpu.memory_space<vmem>>, %arg7: memref<1x1xf32, #tpu.memory_space<vmem>>, %arg8: memref<1x512xf32, #tpu.memory_space<vmem>>) attributes {dimension_semantics = [#tpu.dimension_semantics<parallel>], iteration_bounds = array<i64: 2>, scalar_prefetch = 0 : i64, scratch_operands = 0 : i64, tpu.core_type = #tpu.core_type<tc>, window_params = [{transform_indices = @transform_0, window_bounds = array<i64: 512, 32>}, {pipeline_mode = #tpu.pipeline_mode<synchronous>, transform_indices = @transform_1, window_bounds = array<i64: 16, 32>}, {pipeline_mode = #tpu.pipeline_mode<synchronous>, transform_indices = @transform_2, window_bounds = array<i64: 16, 1>}, {pipeline_mode = #tpu.pipeline_mode<synchronous>, transform_indices = @transform_3, window_bounds = array<i64: 16, 16>}, {pipeline_mode = #tpu.pipeline_mode<synchronous>, transform_indices = @transform_4, window_bounds = array<i64: 16, 1>}, {pipeline_mode = #tpu.pipeline_mode<synchronous>, transform_indices = @transform_5, window_bounds = array<i64: 1, 16>}, {pipeline_mode = #tpu.pipeline_mode<synchronous>, transform_indices = @transform_6, window_bounds = array<i64: 1, 1>}, {transform_indices = @transform_7, window_bounds = array<i64: 1, 512>}]} {
    %c0 = arith.constant 0 : index
    %c0_0 = arith.constant 0 : index
    %0 = vector.load %arg1[%c0, %c0_0] : memref<512x32xf32, #tpu.memory_space<vmem>>, vector<512x32xf32>
    %c0_1 = arith.constant 0 : index
    %c0_2 = arith.constant 0 : index
    %1 = vector.load %arg2[%c0_1, %c0_2] : memref<16x32xf32, #tpu.memory_space<vmem>>, vector<16x32xf32>
    %cst = arith.constant dense<0.000000e+00> : vector<16x512xf32>
    %2 = tpu.matmul %1, %0, %cst {dimension_numbers = #tpu.dot_dimension_numbers<[1], [1], [0], [0], [0, 0, 1, 0], [], []>} : vector<16x32xf32>, vector<512x32xf32>, vector<16x512xf32> -> vector<16x512xf32>
    %c0_3 = arith.constant 0 : index
    %c0_4 = arith.constant 0 : index
    %3 = vector.load %arg3[%c0_3, %c0_4] : memref<16x1xf32, #tpu.memory_space<vmem>>, vector<16x1xf32>
    %4 = vector.broadcast %3 : vector<16x1xf32> to vector<16x512xf32>
    %5 = arith.addf %2, %4 : vector<16x512xf32>
    %cst_5 = arith.constant 0.000000e+00 : f32
    %6 = vector.broadcast %cst_5 : f32 to vector<16x512xf32>
    %7 = arith.maximumf %5, %6 : vector<16x512xf32>
    %c0_6 = arith.constant 0 : index
    %c0_7 = arith.constant 0 : index
    %8 = vector.load %arg4[%c0_6, %c0_7] : memref<16x16xf32, #tpu.memory_space<vmem>>, vector<16x16xf32>
    %cst_8 = arith.constant dense<0.000000e+00> : vector<16x512xf32>
    %9 = tpu.matmul %8, %7, %cst_8 {dimension_numbers = #tpu.dot_dimension_numbers<[1], [0], [0], [1], [0, 0, 1, 1], [], []>} : vector<16x16xf32>, vector<16x512xf32>, vector<16x512xf32> -> vector<16x512xf32>
    %c0_9 = arith.constant 0 : index
    %c0_10 = arith.constant 0 : index
    %10 = vector.load %arg5[%c0_9, %c0_10] : memref<16x1xf32, #tpu.memory_space<vmem>>, vector<16x1xf32>
    %11 = vector.broadcast %10 : vector<16x1xf32> to vector<16x512xf32>
    %12 = arith.addf %9, %11 : vector<16x512xf32>
    %cst_11 = arith.constant 0.000000e+00 : f32
    %13 = vector.broadcast %cst_11 : f32 to vector<16x512xf32>
    %14 = arith.maximumf %12, %13 : vector<16x512xf32>
    %c0_12 = arith.constant 0 : index
    %c0_13 = arith.constant 0 : index
    %15 = vector.load %arg6[%c0_12, %c0_13] : memref<1x16xf32, #tpu.memory_space<vmem>>, vector<1x16xf32>
    %cst_14 = arith.constant dense<0.000000e+00> : vector<1x512xf32>
    %16 = tpu.matmul %15, %14, %cst_14 {dimension_numbers = #tpu.dot_dimension_numbers<[1], [0], [0], [1], [0, 0, 1, 1], [], []>} : vector<1x16xf32>, vector<16x512xf32>, vector<1x512xf32> -> vector<1x512xf32>
    %c0_15 = arith.constant 0 : index
    %c0_16 = arith.constant 0 : index
    %17 = vector.load %arg7[%c0_15, %c0_16] : memref<1x1xf32, #tpu.memory_space<vmem>>, vector<1x1xf32>
    %18 = vector.broadcast %17 : vector<1x1xf32> to vector<1x512xf32>
    %19 = arith.addf %16, %18 : vector<1x512xf32>
    %20 = arith.negf %19 : vector<1x512xf32>
    %21 = math.exp %20 : vector<1x512xf32>
    %cst_17 = arith.constant 1.000000e+00 : f32
    %22 = vector.broadcast %cst_17 : f32 to vector<1x512xf32>
    %23 = arith.addf %22, %21 : vector<1x512xf32>
    %24 = arith.divf %22, %23 : vector<1x512xf32>
    %c0_18 = arith.constant 0 : index
    %c0_19 = arith.constant 0 : index
    %25 = vector.load %arg8[%c0_18, %c0_19] : memref<1x512xf32, #tpu.memory_space<vmem>>, vector<1x512xf32>
    tpu.vector_store %arg8[%c0_18, %c0_19], %24 {strides = array<i32>} : memref<1x512xf32, #tpu.memory_space<vmem>>, vector<1x512xf32>,
    return
  }
  func.func @transform_0(%arg0: i32) -> (i32, i32) {
    %c0_i32 = arith.constant 0 : i32
    %c0_i32_0 = arith.constant 0 : i32
    return %arg0, %c0_i32 : i32, i32
  }
  func.func @transform_1(%arg0: i32) -> (i32, i32) {
    %c0_i32 = arith.constant 0 : i32
    %c0_i32_0 = arith.constant 0 : i32
    %c0_i32_1 = arith.constant 0 : i32
    return %c0_i32, %c0_i32_0 : i32, i32
  }
  func.func @transform_2(%arg0: i32) -> (i32, i32) {
    %c0_i32 = arith.constant 0 : i32
    %c0_i32_0 = arith.constant 0 : i32
    %c0_i32_1 = arith.constant 0 : i32
    return %c0_i32, %c0_i32_0 : i32, i32
  }
  func.func @transform_3(%arg0: i32) -> (i32, i32) {
    %c0_i32 = arith.constant 0 : i32
    %c0_i32_0 = arith.constant 0 : i32
    %c0_i32_1 = arith.constant 0 : i32
    return %c0_i32, %c0_i32_0 : i32, i32
  }
  func.func @transform_4(%arg0: i32) -> (i32, i32) {
    %c0_i32 = arith.constant 0 : i32
    %c0_i32_0 = arith.constant 0 : i32
    %c0_i32_1 = arith.constant 0 : i32
    return %c0_i32, %c0_i32_0 : i32, i32
  }
  func.func @transform_5(%arg0: i32) -> (i32, i32) {
    %c0_i32 = arith.constant 0 : i32
    %c0_i32_0 = arith.constant 0 : i32
    %c0_i32_1 = arith.constant 0 : i32
    return %c0_i32, %c0_i32_0 : i32, i32
  }
  func.func @transform_6(%arg0: i32) -> (i32, i32) {
    %c0_i32 = arith.constant 0 : i32
    %c0_i32_0 = arith.constant 0 : i32
    %c0_i32_1 = arith.constant 0 : i32
    return %c0_i32, %c0_i32_0 : i32, i32
  }
  func.func @transform_7(%arg0: i32) -> (i32, i32) {
    %c0_i32 = arith.constant 0 : i32
    %c0_i32_0 = arith.constant 0 : i32
    return %c0_i32, %arg0 : i32, i32
  }
}

</mosaic_0001>

<bundles_post_ra>
// kernel: discriminator_forward.1
= control target key start
LH: loop header
LB: loop body
LE: loop exit
PB: predicated region body
PF: predicated region fallthrough
CT: control target
= control target key end

     0   :  { %s1940_s0 = inlined_call_operand.vmem [shape: f32[1000,32], index: 0, kind: input, shape index: {}]   ;;  %s1941_s1 = inlined_call_operand.vmem [shape: f32[16,32], index: 1, kind: input, shape index: {}]   ;;  %s1942_s2 = inlined_call_operand.vmem [shape: f32[16,1], index: 2, kind: input, shape index: {}]   ;;  %s1943_s3 = inlined_call_operand.vmem [shape: f32[16,16], index: 3, kind: input, shape index: {}]   ;;  %s1944_s4 = inlined_call_operand.vmem [shape: f32[16,1], index: 4, kind: input, shape index: {}]   ;;  %s1945_s5 = inlined_call_operand.vmem [shape: f32[1,16], index: 5, kind: input, shape index: {}]   ;;  %s1946_s6 = inlined_call_operand.<no memory space> [shape: f32[1,1], index: 6, kind: input, shape index: {}]   ;;  %s1947_s7 = inlined_call_operand.hbm [shape: f32[1,1024], index: 7, kind: output, shape index: {}]  }
   0x1   :  { %v12_v0 = vstv %s1946_s6 }
   0x2   :  { %13 = vst [vmem:[#allocation2] sm:$0x1] %v12_v0 }
   0x3   :  { %14 = vsyncpa [#allocation4], 0 }
   0x4   :  { %16 = vsyncpa [#allocation4 + $0x1], 0  ;;  %s1658_s26 = smov 0   ;;  %s1660_s27 = smov 0  }
   0x5   :  { %s1662_s28 = smov 0   ;;  %s1664_s29 = smov 0  }
   0x6 LB: > { %s1211_s6 = sadd.s32 4294967295, %s1609_s29   ;;  %s1212_s30 = sadd.s32 4294967294, %s1609_s29   ;;  %s1609_s29 = sphi %s1664_s29, %s1955_s29   ;;  %s1605_s28 = sphi %s1662_s28, %s1954_s28   ;;  %s1601_s27 = sphi %s1660_s27, %s1953_s27   ;;  %s1597_s26 = sphi %s1658_s26, %s1952_s26  }
   0x7   : > { %s1681_s8 = sadd.s32 1, %s1609_s29   ;;  %s181_s9 = sadd.s32 1, %s1605_s28 }
   0x8   : > { %s178_s10 = ssub.s32 %s1609_s29, %s1681_s8  ;;  %p191_p0 = scmp.ne.s32.totalorder %s1605_s28, %s1601_s27 }
   0x9   : > { %p179_p1 = scmp.eq.s32.totalorder %s178_s10, 0  ;;  %p192_p2 = scmp.eq.s32.totalorder %s1211_s6, 1 }
   0xa   : > { %p197_p3 = scmp.ne.s32.totalorder %s1601_s27, %s1597_s26  ;;  %p198_p4 = scmp.eq.s32.totalorder %s1212_s30, 1 }
   0xb   : > { %s1691_s11 = scalar_select %p179_p1, %s1605_s28, %s181_s9  }
   0xc   : > { %p1693_p5 = por %p192_p2, %p191_p0  ;;  %p1697_p6 = por %p198_p4, %p197_p3 }
   0xd   : > { %p1215_p7 = scmp.ge.s32.totalorder %s1609_s29, 1  ;;  %p251_p8 = scmp.lt.s32.totalorder %s1609_s29, 3 }
   0xf   : > { %p252_p9 = pnand %p1215_p7, %p251_p8 }
  0x10   : > { %s1703_s14 = sshll.u32 (!%p252_p9), %s1211_s6, 6  ;;  %vm380_vm0 = vcmask (!%p252_p9), 261120   ;;  %v1708_v1 = vld [vmem:[%s1941_s1] sm:$0xff] (!%p252_p9)  ;;  %v1611_v3 = vmov (!%p252_p9), 0   ;;  %v369_v4 = vld [vmem:[%s1942_s2 + $0x8] sm:$0xff] (!%p252_p9)  ;;  %v1612_v5 = vmov (!%p252_p9), 0.0  }
  0x11   : > { %255 = sbr.rel (%p252_p9) target bundleno = 815 (0x32f), region = 48  ;;  %v368_v2 = vld [vmem:[%s1942_s2] sm:$0xff] (!%p252_p9)  ;;  %p292_p10 = scmp.lt.s32.totalorder (!%p252_p9), %s1703_s14, 124  ;;  %1335 = vmatprep.mubr.msk.f32.mxu0 (!%p252_p9), %vm380_vm0, %v1708_v1  ;;  %1371 = vmatprep.mubr.msk.f32.mxu1 (!%p252_p9), %vm380_vm0, %v1708_v1  ;;  %vm1729_vm1 = vmpackc.low (!%p252_p9), %vm380_vm0, %vm380_vm0  ;;  %vm755_vm2 = vcmask (!%p252_p9), 130048  }
  0x12   : > { %1529 = vset.pattern.permute.xlu0 (!%p252_p9), %v1611_v3  ;;  %1530 = vset.pattern.permute.xlu1 (!%p252_p9), %v1611_v3  ;;  %v925_v9 = vld [vmem:[#allocation2] sm:$0x1] (!%p252_p9)  ;;  %s284_s23 = sand.u32 (!%p252_p9), 1, %s1601_s27   ;;  %s1898_s10 = scalar_lea.hbm (!%p252_p9), %s1947_s7, %s1703_s14 }
  0x13   : > { %372 = vperm.xlu0 (!%p252_p9), %1529, %v368_v2   ;;  %s1216_s24 = sshll.u32 (!%p252_p9), %s284_s23, 2  ;;  %s1139_s15 = scalar_lea.sflag (!%p252_p9), [#allocation4], %s284_s23 }
  0x14   : > { %s1614_s17 = smov (!%p252_p9), [#allocation3]  }
  0x15   : > { %s1551_s18 = sshll.u32 (!%p252_p9), %s1614_s17, 4  ;;  %s1552_s18 = int_to_ptr.vmem [resolvable:$false] %s1551_s18 }
  0x17   : > { %377 = vperm.xlu0 (!%p252_p9), %1529, %v369_v4  }
  0x18   : > { %s293_s19 = scalar_select %p292_p10, %s1703_s14, 124 }
  0x1a   : > { %s1218_s22 = sshll.u32 %s293_s19, 3  ;;  %s1553_s19 = scalar_lea.vmem %s1552_s18, 128 }
  0x1b   : > { %s1725_s25 = scalar_lea.vmem %s1940_s0, %s1218_s22  ;;  %928 = vperm.xlu0 %1529, %v925_v9  }
  0x1c   : > { %v318_v6 = vld [vmem:[%s1725_s25 + $0x80] sm:$0xff]  ;;  %v319_v7 = vld [vmem:[%s1725_s25 + $0x88] sm:$0xff]  ;;  %v320_v18 = vld [vmem:[%s1725_s25 + $0x90] sm:$0xff] }
  0x1d   : > { %v350_v8 = vld [vmem:[%s1725_s25 + $0x180] sm:$0xff]  ;;  %v1375_v10 = vpack.c.bf16 %v319_v7, %v318_v6  ;;  %v351_v11 = vld [vmem:[%s1725_s25 + $0x188] sm:$0xff]  ;;  %v321_v20 = vld [vmem:[%s1725_s25 + $0x98] sm:$0xff] }
  0x1e   : > { %v302_v12 = vld [vmem:[%s1725_s25] sm:$0xff]  ;;  %v303_v13 = vld [vmem:[%s1725_s25 + $0x8] sm:$0xff]  ;;  %v1423_v14 = vpack.c.bf16 %v351_v11, %v350_v8  ;;  %v352_v21 = vld [vmem:[%s1725_s25 + $0x190] sm:$0xff]  ;;  %v1381_v23 = vpack.c.bf16 %v321_v20, %v320_v18 }
  0x1f   : > { %v1378_v15 = vpack.c.bf16 %v303_v13, %v302_v12  ;;  %v334_v16 = vld [vmem:[%s1725_s25 + $0x100] sm:$0xff]  ;;  %v335_v17 = vld [vmem:[%s1725_s25 + $0x108] sm:$0xff]  ;;  %1377 = vmatprep.subr.msk.bf16.mxu0 %vm1729_vm1, %v1375_v10  ;;  %v353_v22 = vld [vmem:[%s1725_s25 + $0x198] sm:$0xff] }
  0x20   : > { %v1426_v19 = vpack.c.bf16 %v335_v17, %v334_v16  ;;  %1425 = vmatprep.subr.msk.bf16.mxu1 %vm1729_vm1, %v1423_v14  ;;  %v1429_v24 = vpack.c.bf16 %v353_v22, %v352_v21  ;;  %v304_v25 = vld [vmem:[%s1725_s25 + $0x10] sm:$0xff]  ;;  %v305_v26 = vld [vmem:[%s1725_s25 + $0x18] sm:$0xff]  ;;  %v322_v29 = vld [vmem:[%s1725_s25 + $0xa0] sm:$0xff] }
  0x21   : > { %1380 = vmatpush3.bf16.xpose.msk.msra.mxu0 %vm1729_vm1, %v1378_v15  ;;  %v336_v27 = vld [vmem:[%s1725_s25 + $0x110] sm:$0xff]  ;;  %v337_v28 = vld [vmem:[%s1725_s25 + $0x118] sm:$0xff]  ;;  %v323_v30 = vld [vmem:[%s1725_s25 + $0xa8] sm:$0xff]  ;;  %v1384_v33 = vpack.c.bf16 %v305_v26, %v304_v25 }
  0x22   : > { %1428 = vmatpush3.bf16.xpose.msk.msra.mxu1 %vm1729_vm1, %v1426_v19  ;;  %1383 = vmatprep.subr.msk.bf16.mxu0 %vm1729_vm1, %v1381_v23  ;;  %v354_v31 = vld [vmem:[%s1725_s25 + $0x1a0] sm:$0xff]  ;;  %v355_v32 = vld [vmem:[%s1725_s25 + $0x1a8] sm:$0xff]  ;;  %v1432_v34 = vpack.c.bf16 %v337_v28, %v336_v27  ;;  %v1387_v35 = vpack.c.bf16 %v323_v30, %v322_v29  ;;  %v324_v41 = vld [vmem:[%s1725_s25 + $0xb0] sm:$0xff] }
  0x23   : > { %1431 = vmatprep.subr.msk.bf16.mxu1 %vm1729_vm1, %v1429_v24  ;;  %v1435_v36 = vpack.c.bf16 %v355_v32, %v354_v31  ;;  %v306_v37 = vld [vmem:[%s1725_s25 + $0x20] sm:$0xff]  ;;  %v307_v38 = vld [vmem:[%s1725_s25 + $0x28] sm:$0xff]  ;;  %v325_v42 = vld [vmem:[%s1725_s25 + $0xb8] sm:$0xff] }
  0x24   : > { %v338_v39 = vld [vmem:[%s1725_s25 + $0x120] sm:$0xff]  ;;  %v339_v40 = vld [vmem:[%s1725_s25 + $0x128] sm:$0xff]  ;;  %v356_v43 = vld [vmem:[%s1725_s25 + $0x1b0] sm:$0xff]  ;;  %v1390_v45 = vpack.c.bf16 %v307_v38, %v306_v37  ;;  %v1393_v47 = vpack.c.bf16 %v325_v42, %v324_v41 }
  0x25   : > { %v357_v44 = vld [vmem:[%s1725_s25 + $0x1b8] sm:$0xff]  ;;  %v1438_v46 = vpack.c.bf16 %v339_v40, %v338_v39  ;;  %v308_v49 = vld [vmem:[%s1725_s25 + $0x30] sm:$0xff]  ;;  %v326_v53 = vld [vmem:[%s1725_s25 + $0xc0] sm:$0xff] }
  0x26   : > { %v1441_v48 = vpack.c.bf16 %v357_v44, %v356_v43  ;;  %v309_v50 = vld [vmem:[%s1725_s25 + $0x38] sm:$0xff]  ;;  %v340_v51 = vld [vmem:[%s1725_s25 + $0x130] sm:$0xff]  ;;  %v327_v54 = vld [vmem:[%s1725_s25 + $0xc8] sm:$0xff] }
  0x27   : > { %v341_v52 = vld [vmem:[%s1725_s25 + $0x138] sm:$0xff]  ;;  %v358_v55 = vld [vmem:[%s1725_s25 + $0x1c0] sm:$0xff]  ;;  %v359_v56 = vld [vmem:[%s1725_s25 + $0x1c8] sm:$0xff]  ;;  %v1396_v57 = vpack.c.bf16 %v309_v50, %v308_v49  ;;  %v1399_v59 = vpack.c.bf16 %v327_v54, %v326_v53 }
  0x28   : > { %v1444_v58 = vpack.c.bf16 %v341_v52, %v340_v51  ;;  %v1447_v60 = vpack.c.bf16 %v359_v56, %v358_v55  ;;  %v310_v61 = vld [vmem:[%s1725_s25 + $0x40] sm:$0xff]  ;;  %v311_v62 = vld [vmem:[%s1725_s25 + $0x48] sm:$0xff]  ;;  %v328_v2 = vld [vmem:[%s1725_s25 + $0xd0] sm:$0xff] }
  0x29   : > { %1386 = vmatpush3.bf16.xpose.msk.msra.mxu0 %vm1729_vm1, %v1384_v33  ;;  %v342_v63 = vld [vmem:[%s1725_s25 + $0x140] sm:$0xff]  ;;  %v343_v0 = vld [vmem:[%s1725_s25 + $0x148] sm:$0xff]  ;;  %v329_v3 = vld [vmem:[%s1725_s25 + $0xd8] sm:$0xff]  ;;  %v1402_v7 = vpack.c.bf16 %v311_v62, %v310_v61 }
  0x2a   : > { %1434 = vmatpush3.bf16.xpose.msk.msra.mxu1 %vm1729_vm1, %v1432_v34  ;;  %1389 = vmatprep.subr.msk.bf16.mxu0 %vm1729_vm1, %v1387_v35  ;;  %v360_v4 = vld [vmem:[%s1725_s25 + $0x1d0] sm:$0xff]  ;;  %v361_v6 = vld [vmem:[%s1725_s25 + $0x1d8] sm:$0xff]  ;;  %v1450_v8 = vpack.c.bf16 %v343_v0, %v342_v63  ;;  %v1405_v9 = vpack.c.bf16 %v329_v3, %v328_v2  ;;  %v330_v15 = vld [vmem:[%s1725_s25 + $0xe0] sm:$0xff] }
  0x2b   : > { %1437 = vmatprep.subr.msk.bf16.mxu1 %vm1729_vm1, %v1435_v36  ;;  %v1453_v10 = vpack.c.bf16 %v361_v6, %v360_v4  ;;  %v312_v11 = vld [vmem:[%s1725_s25 + $0x50] sm:$0xff]  ;;  %v313_v12 = vld [vmem:[%s1725_s25 + $0x58] sm:$0xff]  ;;  %v331_v16 = vld [vmem:[%s1725_s25 + $0xe8] sm:$0xff] }
  0x2c   : > { %v344_v13 = vld [vmem:[%s1725_s25 + $0x150] sm:$0xff]  ;;  %v345_v14 = vld [vmem:[%s1725_s25 + $0x158] sm:$0xff]  ;;  %v362_v17 = vld [vmem:[%s1725_s25 + $0x1e0] sm:$0xff]  ;;  %v1408_v19 = vpack.c.bf16 %v313_v12, %v312_v11  ;;  %v1411_v21 = vpack.c.bf16 %v331_v16, %v330_v15 }
  0x2d   : > { %v363_v18 = vld [vmem:[%s1725_s25 + $0x1e8] sm:$0xff]  ;;  %v1456_v20 = vpack.c.bf16 %v345_v14, %v344_v13  ;;  %v314_v23 = vld [vmem:[%s1725_s25 + $0x60] sm:$0xff]  ;;  %v332_v27 = vld [vmem:[%s1725_s25 + $0xf0] sm:$0xff] }
  0x2e   : > { %v1459_v22 = vpack.c.bf16 %v363_v18, %v362_v17  ;;  %v315_v24 = vld [vmem:[%s1725_s25 + $0x68] sm:$0xff]  ;;  %v346_v25 = vld [vmem:[%s1725_s25 + $0x160] sm:$0xff]  ;;  %v333_v28 = vld [vmem:[%s1725_s25 + $0xf8] sm:$0xff] }
  0x2f   : > { %v347_v26 = vld [vmem:[%s1725_s25 + $0x168] sm:$0xff]  ;;  %v364_v29 = vld [vmem:[%s1725_s25 + $0x1f0] sm:$0xff]  ;;  %v365_v30 = vld [vmem:[%s1725_s25 + $0x1f8] sm:$0xff]  ;;  %v1414_v31 = vpack.c.bf16 %v315_v24, %v314_v23  ;;  %v1417_v33 = vpack.c.bf16 %v333_v28, %v332_v27 }
  0x30   : > { %v1462_v32 = vpack.c.bf16 %v347_v26, %v346_v25  ;;  %v1465_v34 = vpack.c.bf16 %v365_v30, %v364_v29  ;;  %v316_v35 = vld [vmem:[%s1725_s25 + $0x70] sm:$0xff]  ;;  %v317_v36 = vld [vmem:[%s1725_s25 + $0x78] sm:$0xff]  ;;  %v367_v41 = vld [vmem:[%s1941_s1 + $0x8] sm:$0xff] }
  0x31   : > { %1392 = vmatpush3.bf16.xpose.msk.msra.mxu0 %vm1729_vm1, %v1390_v45  ;;  %v348_v37 = vld [vmem:[%s1725_s25 + $0x170] sm:$0xff]  ;;  %v349_v38 = vld [vmem:[%s1725_s25 + $0x178] sm:$0xff]  ;;  %v1420_v39 = vpack.c.bf16 %v317_v36, %v316_v35  ;;  %v743_v42 = vld [vmem:[%s1944_s4] sm:$0xff]  ;;  %s286_s25 = scalar_lea.vmem [#allocation3], %s1216_s24 }
  0x32   : > { %1440 = vmatpush3.bf16.xpose.msk.msra.mxu1 %vm1729_vm1, %v1438_v46  ;;  %1395 = vmatprep.subr.msk.bf16.mxu0 %vm1729_vm1, %v1393_v47  ;;  %v1468_v40 = vpack.c.bf16 %v349_v38, %v348_v37  ;;  %v741_v11 = vld [vmem:[%s1943_s3] sm:$0xff]  ;;  %v742_v12 = vld [vmem:[%s1943_s3 + $0x8] sm:$0xff]  ;;  %s1153_s6 = sshll.u32 %s286_s25, 4  ;;  %s1900_s6 = int_to_ptr.vmem [resolvable:$true] %s1153_s6 }
  0x33   : > { %1443 = vmatprep.subr.msk.bf16.mxu1 %vm1729_vm1, %v1441_v48  ;;  %747 = vperm.xlu1 %1530, %v743_v42   ;;  %v924_v42 = vld [vmem:[%s1945_s5] sm:$0x1]  ;;  %s1547_s16 = scalar_lea.vmem %s1900_s6, 64  ;;  %p1554_p0 = scmp.lt.s32.totalorder %s1900_s6, %s1552_s18 }
  0x34   : > { %p1548_p11 = scmp.ne.s32.totalorder %s1900_s6, %s1547_s16  ;;  %p1555_p1 = scmp.lt.s32.totalorder %s1553_s19, %s1547_s16 }
  0x36   : > { %p1549_p12 = pnand %p1548_p11, %p1693_p5  ;;  %p1556_p2 = por %p1555_p1, %p1554_p0 }
  0x38   : > { %p1550_p13 = pneg %p1549_p12 }
  0x39   : > { %1398 = vmatpush3.bf16.xpose.msk.msra.mxu0 %vm1729_vm1, %v1396_v57 }
  0x3a   : > { %1446 = vmatpush3.bf16.xpose.msk.msra.mxu1 %vm1729_vm1, %v1444_v58  ;;  %1401 = vmatprep.subr.msk.bf16.mxu0 %vm1729_vm1, %v1399_v59  ;;  %p1557_p3 = pnand %p1556_p2, %p1550_p13 }
  0x3b   : > { %1449 = vmatprep.subr.msk.bf16.mxu1 %vm1729_vm1, %v1447_v60 }
  0x41   : > { %1404 = vmatpush3.bf16.xpose.msk.msra.mxu0 %vm1729_vm1, %v1402_v7 }
  0x42   : > { %1452 = vmatpush3.bf16.xpose.msk.msra.mxu1 %vm1729_vm1, %v1450_v8  ;;  %1407 = vmatprep.subr.msk.bf16.mxu0 %vm1729_vm1, %v1405_v9 }
  0x43   : > { %1455 = vmatprep.subr.msk.bf16.mxu1 %vm1729_vm1, %v1453_v10 }
  0x49   : > { %1410 = vmatpush3.bf16.xpose.msk.msra.mxu0 %vm1729_vm1, %v1408_v19 }
  0x4a   : > { %1458 = vmatpush3.bf16.xpose.msk.msra.mxu1 %vm1729_vm1, %v1456_v20  ;;  %1413 = vmatprep.subr.msk.bf16.mxu0 %vm1729_vm1, %v1411_v21 }
  0x4b   : > { %1461 = vmatprep.subr.msk.bf16.mxu1 %vm1729_vm1, %v1459_v22 }
  0x51   : > { %1416 = vmatpush3.bf16.xpose.msk.msra.mxu0 %vm1729_vm1, %v1414_v31 }
  0x52   : > { %1464 = vmatpush3.bf16.xpose.msk.msra.mxu1 %vm1729_vm1, %v1462_v32  ;;  %1419 = vmatprep.subr.msk.bf16.mxu0 %vm1729_vm1, %v1417_v33 }
  0x53   : > { %1467 = vmatprep.subr.msk.bf16.mxu1 %vm1729_vm1, %v1465_v34 }
  0x59   : > { %1422 = vmatpush3.bf16.xpose.msk.msra.mxu0 %vm1729_vm1, %v1420_v39 }
  0x5a   : > { %1470 = vmatpush3.bf16.xpose.msk.msra.mxu1 %vm1729_vm1, %v1468_v40 }
  0x60   : > { %1336 = vmatmul.mubr.msk.f32.vlgmr.msra.gmra.mrb[0].mxu0 %vm380_vm0, %v1708_v1 }
  0x61   : > { %1372 = vmatmul.mubr.msk.f32.vlgmr.msra.gmra.mrb[0].mxu1 %vm380_vm0, %v1708_v1  ;;  %1337 = vmatprep.mubr.msk.f32.mxu0 %vm380_vm0, %v367_v41  ;;  %v744_v1 = vld [vmem:[%s1944_s4 + $0x8] sm:$0xff] }
  0x62   : > { %1373 = vmatprep.mubr.msk.f32.mxu1 %vm380_vm0, %v367_v41  ;;  %752 = vperm.xlu1 %1530, %v744_v1   ;;  %v931_v1 = vlaneseq }
  0x64   : > { %1338 = vmatmul.mubr.msk.f32.gmra.mrb[2].mxu0 %vm380_vm0, %v367_v41  ;;  %vm1135_vm3 = vcmp.lt.s32.totalorder %v931_v1, 512 }
  0x65   : > { %1374 = vmatmul.mubr.msk.f32.gmra.mrb[2].mxu1 %vm380_vm0, %v367_v41  ;;  %826 = vmatprep.mubr.f32.mxu0 %v1612_v5 }
  0x66   : > { %903 = vmatprep.mubr.f32.mxu1 %v1612_v5 }
  0x92   : > { %v373_v43 = vpop.permute.xlu0 %372 }
  0x96   : > { %v378_v49 = vpop.permute.xlu0 %377 }
  0xb2   : > { %v748_v13 = vpop.permute.xlu1 %747 }
  0xe1   : > { %v753_v20 = vpop.permute.xlu1 %752 }
 0x133   : > { %v645_v44 = vpop.f32.mrb[0].mxu0 }
 0x134   : > { %v722_v45 = vpop.f32.mrb[0].mxu1  ;;  %v647_v46 = vpop.f32.mrb[1].mxu0  ;;  %v646_v48 = vadd.f32 %v645_v44, %v373_v43 }
 0x135   : > { %v724_v47 = vpop.f32.mrb[1].mxu1  ;;  %v723_v50 = vadd.f32 %v722_v45, %v373_v43  ;;  %v648_v51 = vadd.f32 %v647_v46, %v373_v43  ;;  %v929_v45 = vpop.permute.xlu0 %928 }
 0x136   : > { %v725_v53 = vadd.f32 %v724_v47, %v373_v43  ;;  %v733_v60 = vmax.f32 %v646_v48, 0.0  ;;  %v932_v43 = vshrl.u32 %v931_v1, 7 }
 0x137   : > { %v651_v52 = vpop.f32.mrb[2].mxu0  ;;  %v735_v63 = vmax.f32 %v723_v50, 0.0  ;;  %v734_v0 = vmax.f32 %v648_v51, 0.0 }
 0x138   : > { %v652_v54 = vadd.f32 %v651_v52, %v378_v49  ;;  %v728_v55 = vpop.f32.mrb[2].mxu1  ;;  %v653_v56 = vpop.f32.mrb[3].mxu0  ;;  %v736_v4 = vmax.f32 %v725_v53, 0.0  ;;  %v933_v44 = vsub.s32 0, %v932_v43 }
 0x139   : > { %v729_v57 = vadd.f32 %v728_v55, %v378_v49  ;;  %v654_v58 = vadd.f32 %v653_v56, %v378_v49  ;;  %v730_v59 = vpop.f32.mrb[3].mxu1 }
 0x13a   : > { %v737_v61 = vmax.f32 %v652_v54, 0.0  ;;  %v731_v62 = vadd.f32 %v730_v59, %v378_v49  ;;  %v934_v46 = vrot.slane %v929_v45, %v933_v44 }
 0x13b   : > { %v739_v2 = vmax.f32 %v729_v57, 0.0  ;;  %v738_v3 = vmax.f32 %v654_v58, 0.0 }
 0x13c   : > { %v1473_v6 = vpack.c.bf16 %v737_v61, %v733_v60  ;;  %v740_v7 = vmax.f32 %v731_v62, 0.0 }
 0x13d   : > { %v1477_v8 = vpack.c.bf16 %v739_v2, %v735_v63  ;;  %v1471_v9 = vpack.c.bf16 %v738_v3, %v734_v0 }
 0x13e   : > { %v1475_v10 = vpack.c.bf16 %v740_v7, %v736_v4  ;;  %v1613_v4 = vmov 1966171168  }
 0x13f   : > { %1472 = vmatprep.subr.bf16.mxu0 %v1471_v9 }
 0x140   : > { %1476 = vmatprep.subr.bf16.mxu1 %v1475_v10  ;;  %1474 = vmatpush1.bf16.msra.mxu0 %v1473_v6  ;;  %v1111_v6 = vunpack.c.l.s4 %v1613_v4 }
 0x141   : > { %1478 = vmatpush1.bf16.msra.mxu1 %v1477_v8 }
 0x142   : > { %v1112_v7 = vunpack.c.0.s8 %v1111_v6 }
 0x143   : > { %1287 = vmatmul.mubr.msk.f32.vlgmr.msra.gmra.mrb[4].mxu0 %vm755_vm2, %v741_v11 }
 0x144   : > { %1289 = vmatmul.mubr.msk.f32.vlgmr.msra.gmra.mrb[4].mxu1 %vm755_vm2, %v741_v11  ;;  %832 = vmatprep.mubr.f32.mxu0 %v1612_v5  ;;  %v1115_v10 = vsub.s32 %v1112_v7, %v932_v43 }
 0x145   : > { %909 = vmatprep.mubr.f32.mxu1 %v1612_v5 }
 0x147   : > { %1288 = vmatmul.mubr.msk.f32.gmra.mrb[6].mxu0 %vm755_vm2, %v742_v12 }
 0x148   : > { %1290 = vmatmul.mubr.msk.f32.gmra.mrb[6].mxu1 %vm755_vm2, %v742_v12  ;;  %1002 = vmatprep.mubr.f32.mxu0 %v1612_v5 }
 0x149   : > { %1073 = vmatprep.mubr.f32.mxu1 %v1612_v5 }
 0x216   : > { %v828_v14 = vpop.f32.mrb[4].mxu0 }
 0x217   : > { %v905_v15 = vpop.f32.mrb[4].mxu1  ;;  %v830_v16 = vpop.f32.mrb[5].mxu0  ;;  %v829_v18 = vadd.f32 %v828_v14, %v748_v13 }
 0x218   : > { %v907_v17 = vpop.f32.mrb[5].mxu1  ;;  %v906_v19 = vadd.f32 %v905_v15, %v748_v13  ;;  %v831_v21 = vadd.f32 %v830_v16, %v748_v13 }
 0x219   : > { %v908_v23 = vadd.f32 %v907_v17, %v748_v13  ;;  %v916_v30 = vmax.f32 %v829_v18, 0.0 }
 0x21a   : > { %v834_v22 = vpop.f32.mrb[6].mxu0  ;;  %v918_v33 = vmax.f32 %v906_v19, 0.0  ;;  %v917_v34 = vmax.f32 %v831_v21, 0.0 }
 0x21b   : > { %v835_v24 = vadd.f32 %v834_v22, %v753_v20  ;;  %v911_v25 = vpop.f32.mrb[6].mxu1  ;;  %v836_v26 = vpop.f32.mrb[7].mxu0  ;;  %v919_v37 = vmax.f32 %v908_v23, 0.0 }
 0x21c   : > { %v912_v27 = vadd.f32 %v911_v25, %v753_v20  ;;  %v837_v28 = vadd.f32 %v836_v26, %v753_v20  ;;  %v913_v29 = vpop.f32.mrb[7].mxu1 }
 0x21d   : > { %v920_v31 = vmax.f32 %v835_v24, 0.0  ;;  %v914_v32 = vadd.f32 %v913_v29, %v753_v20 }
 0x21e   : > { %v922_v35 = vmax.f32 %v912_v27, 0.0  ;;  %v921_v36 = vmax.f32 %v837_v28, 0.0 }
 0x21f   : > { %v1481_v38 = vpack.c.bf16 %v920_v31, %v916_v30  ;;  %v923_v39 = vmax.f32 %v914_v32, 0.0 }
 0x220   : > { %v1485_v40 = vpack.c.bf16 %v922_v35, %v918_v33  ;;  %v1479_v41 = vpack.c.bf16 %v921_v36, %v917_v34 }
 0x221   : > { %v1483_v5 = vpack.c.bf16 %v923_v39, %v919_v37 }
 0x222   : > { %1480 = vmatprep.subr.bf16.mxu0 %v1479_v41 }
 0x223   : > { %1484 = vmatprep.subr.bf16.mxu1 %v1483_v5  ;;  %1482 = vmatpush1.bf16.msra.mxu0 %v1481_v38 }
 0x224   : > { %1486 = vmatpush1.bf16.msra.mxu1 %v1485_v40 }
 0x226   : > { %1291 = vmatmul.mubr.msk.f32.vlgmr.msra.gmra.mrb[8].mxu0 %vm755_vm2, %v924_v42 }
 0x227   : > { %1292 = vmatmul.mubr.msk.f32.vlgmr.msra.gmra.mrb[8].mxu1 %vm755_vm2, %v924_v42 }
 0x2f9   : > { %v1004_v47 = vpop.f32.mrb[8].mxu0 }
 0x2fa   : > { %v1005_v48 = vadd.f32 %v1004_v47, %v934_v46  ;;  %v1075_v49 = vpop.f32.mrb[8].mxu1  ;;  %v1006_v50 = vpop.f32.mrb[9].mxu0 }
 0x2fb   : > { %v1076_v51 = vadd.f32 %v1075_v49, %v934_v46  ;;  %v1007_v52 = vadd.f32 %v1006_v50, %v934_v46  ;;  %v1077_v53 = vpop.f32.mrb[9].mxu1 }
 0x2fc   : > { %v1293_v54 = vmul.f32 -1.442695, %v1005_v48  ;;  %v1078_v55 = vadd.f32 %v1077_v53, %v934_v46 }
 0x2fd   : > { %v1295_v56 = vmul.f32 -1.442695, %v1076_v51  ;;  %v1294_v57 = vmul.f32 -1.442695, %v1007_v52 }
 0x2fe   : > { %1531 = vpow2.f32 %v1293_v54  ;;  %v1296_v58 = vmul.f32 -1.442695, %v1078_v55 }
 0x2ff   : > { %1533 = vpow2.f32 %v1295_v56 }
 0x300   : > { %1535 = vpow2.f32 %v1294_v57 }
 0x301   : > { %1537 = vpow2.f32 %v1296_v58 }
 0x308   : > { %v1532_v59 = vpop.eup %1531 }
 0x309   : > { %v1534_v60 = vpop.eup %1533  ;;  %v1092_v61 = vadd.f32 1.0, %v1532_v59 }
 0x30a   : > { %v1536_v62 = vpop.eup %1535  ;;  %v1094_v63 = vadd.f32 1.0, %v1534_v60 }
 0x30b   : > { %v1538_v0 = vpop.eup %1537  ;;  %1539 = vrcp.f32 %v1092_v61  ;;  %v1093_v2 = vadd.f32 1.0, %v1536_v62 }
 0x30c   : > { %1541 = vrcp.f32 %v1094_v63  ;;  %v1095_v3 = vadd.f32 1.0, %v1538_v0 }
 0x30d   : > { %1543 = vrcp.f32 %v1093_v2 }
 0x30e   : > { %1545 = vrcp.f32 %v1095_v3 }
 0x315   : > { %v1540_v8 = vpop.eup %1539 }
 0x316   : > { %v1542_v9 = vpop.eup %1541 }
 0x317   : > { %v1544_v11 = vpop.eup %1543 }
 0x318   : > { %v1546_v12 = vpop.eup %1545  ;;  %v1108_v13 = vcombine.low %v1540_v8, %v1544_v11 }
 0x319   : > { %v1109_v14 = vcombine.low %v1542_v9, %v1546_v12 }
 0x31a   : > { %v1116_v15 = vrot.slane %v1108_v13, %v1115_v10 }
 0x31b   : > { %v1123_v16 = vrot.slane %v1109_v14, %v1115_v10 }
 0x31d   : > { %v1124_v17 = vcombine.low %v1116_v15, %v1123_v16 }
 0x31f   : > { %v1131_v18 = vrot.slane %v1124_v17, %v1115_v10 }
 0x321   : > { %1137 = vst.msk [vmem:[%s286_s25] sm:$0xf] %vm1135_vm3, %v1131_v18 }
 0x322   : > { %1560 = shalt.err (!%p1557_p3)
}
 0x323   : > { %s1561_s14 = scalar_lea.hbm %s1898_s10, 64  ;;  %s1565_s22 = scalar_lea.hbm %s1947_s7, 128 }
 0x324   : > { %p1562_p4 = scmp.ne.s32.totalorder %s1898_s10, %s1561_s14  ;;  %p1566_p9 = scmp.lt.u32.totalorder %s1898_s10, %s1947_s7 }
 0x325   : > { %p1567_p10 = scmp.lt.u32.totalorder %s1565_s22, %s1561_s14  ;;  %p1569_p12 = scmp.lt.u32.totalorder %s1561_s14, %s1898_s10 }
 0x326   : > { %p1563_p7 = pnand %p1562_p4, %p1693_p5 }
 0x327   : > { %p1568_p11 = por %p1567_p10, %p1566_p9 }
 0x328   : > { %p1564_p8 = pneg %p1563_p7 }
 0x329   : > { %p1570_p13 = por %p1569_p12, %p1568_p11 }
 0x32b   : > { %p1571_p0 = pnand %p1570_p13, %p1564_p8 }
 0x32d   : > { %1574 = shalt.err (!%p1571_p0)
}
 0x32e   : > { %1487 = dma.vmem_to_hbm [thread:$0]  (%p1693_p5), %s1900_s6, 64, %s1898_s10, %s1139_s15  }
 0x32f PF: > { %p1493_p1 = scmp.ge.s32.totalorder %s1609_s29, 2  ;;  %s1165_s25 = sand.u32 1, %s1597_s26  }
 0x330   : > { %s1166_s30 = scalar_lea.sflag [#allocation4], %s1165_s25 }
 0x331   : > { %p1490_p2 = pnand %p1493_p1, %p1697_p6 }
 0x333   : > { %1592 = dma.done.wait (!%p1490_p2), %s1166_s30, 64  }
 0x334   : > { %1594 = vsyncadd (!%p1490_p2), %s1166_s30, 4294967232  ;;  %p19_p3 = scmp.ge.s32.totalorder %s1681_s8, 4   ;;  %s1952_s26 = smov %s1601_s27 }
 0x335   : > { %s1953_s27 = smov %s1605_s28  ;;  %s1954_s28 = smov %s1691_s11 }
 0x336   : > { %s1955_s29 = smov %s1681_s8  ;;  %21 = sbr.rel (!%p19_p3) target bundleno = 6 (0x6), region = 83 }
 0x33d   :  { %1171 = vsyncpa [#allocation4], 1 }
 0x33e   :  { %1173 = vsyncpa [#allocation4 + $0x1], 1 }

</bundles_post_ra>
